<compile_context>
chip_gen: v7x
topology: tpu7x:2x2x1
jax: 0.10.0
libtpu: 0.0.40
codegen_flags: <defaults>
</compile_context>

<pallas_src>
import jax
import jax.numpy as jnp
from jax.experimental import pallas as pl
from jax.experimental.pallas import tpu as pltpu


LANE_CANDIDATES = (512, 256, 128)       # lane-dense last dims (multiples of 128)
DEFAULT_LANE = 512
TARGET_BLOCK_BYTES = 4 * 1024 * 1024    # ~4 MiB per input block
MIN_GRID_STEPS = 4                      # keep the DMA pipeline fed / v7x 2 TCs busy
VMEM_LIMIT_BYTES = 40 * 1024 * 1024     # 2x(in+out) 4 MiB buffers + headroom


def _round_up(a, m):
    return ((a + m - 1) // m) * m


def _make_shift_clip_kernel(scale: float, lower: float, upper: float):
    """scale / lower / upper are baked in as compile-time constants."""

    def kernel(x_ref, o_ref):
        x = x_ref[...].astype(jnp.float32)      # in-kernel cast (VPU slack)
        y = jnp.floor(x * scale)                # x >> out_shift (power-of-two scale)
        y = jnp.clip(y, lower, upper)
        o_ref[...] = y.astype(o_ref.dtype)

    return kernel


class PULPNNShiftClipPallas:
    def __init__(self, out_shift=None, BitI=8, BitW=8, BitO=8, SgnO=False,
                 out_dtype=None, alias_input=False):
        self.BitO = BitO
        self.SgnO = SgnO
        if out_shift is None:
            d = max(BitI - BitW, BitW - BitI)
            self.out_shift = float(max(self.BitO - d, d - self.BitO))
        else:
            self.out_shift = float(out_shift)

        if SgnO:
            self.upper = float(2 ** (BitO - 1) - 1)
            self.lower = float(-(2 ** (BitO - 1)))
        else:
            self.upper = float(2 ** BitO - 1)
            self.lower = 0.0

        self.scale = 2.0 ** (-self.out_shift)
        self.out_dtype = out_dtype          # None -> echo input dtype (PyTorch contract)
        self.alias_input = alias_input      # only useful if the caller donates x

    # ------------------------------------------------------------------ #

    def _run_small(self, xf, out_dtype):
        """Tiny input: whole array as one full-extent block (no grid)."""
        n = int(xf.shape[0])
        x2d = xf.reshape(1, n)
        kernel = _make_shift_clip_kernel(self.scale, self.lower, self.upper)
        out2d = pl.pallas_call(
            kernel,
            out_shape=jax.ShapeDtypeStruct((1, n), out_dtype),
        )(x2d)
        return out2d.reshape(-1)

    def _run_2d(self, xf, rows, lane, out_dtype):
        """Tiled streaming kernel over a (rows, lane) view of xf."""
        x2d = xf.reshape(rows, lane)
        itemsize = x2d.dtype.itemsize

        if rows <= 8:
            # Full-extent row dim is allowed even when not a multiple of 8.
            block_rows = rows
        else:
            max_rows = max(8, (TARGET_BLOCK_BYTES // (lane * itemsize)) // 8 * 8)
            # Aim for >= MIN_GRID_STEPS grid steps so prefetch of block i+1
            # overlaps writeback of block i-1 and v7x can use both TCs.
            target = _round_up(pl.cdiv(rows, MIN_GRID_STEPS), 8)
            block_rows = int(max(8, min(max_rows, target)))

        grid = (pl.cdiv(rows, block_rows),)
        kernel = _make_shift_clip_kernel(self.scale, self.lower, self.upper)

        extra = {}
        if self.alias_input and out_dtype == x2d.dtype:
            extra["input_output_aliases"] = {0: 0}

        out2d = pl.pallas_call(
            kernel,
            out_shape=jax.ShapeDtypeStruct((rows, lane), out_dtype),
            grid=grid,
            in_specs=[pl.BlockSpec((block_rows, lane), lambda i: (i, 0))],
            out_specs=pl.BlockSpec((block_rows, lane), lambda i: (i, 0)),
            compiler_params=pltpu.CompilerParams(
                dimension_semantics=("parallel",),   # v7x: shard across 2 TCs
                vmem_limit_bytes=VMEM_LIMIT_BYTES,
            ),
            **extra,
        )(x2d)
        return out2d.reshape(-1)

    # ------------------------------------------------------------------ #

    def __call__(self, x):
        orig_shape = x.shape
        out_dtype = self.out_dtype if self.out_dtype is not None else x.dtype
        xf = x.reshape(-1)
        n = int(xf.shape[0])

        # Prefer a lane width that divides n exactly -> zero padding / copies.
        lane = None
        for cand in LANE_CANDIDATES:
            if n % cand == 0:
                lane = cand
                break

        if lane is not None:
            out_flat = self._run_2d(xf, n // lane, lane, out_dtype)
        elif n < DEFAULT_LANE:
            out_flat = self._run_small(xf, out_dtype)
        else:
            # Misaligned: Pallas on the 512-aligned prefix, <512-elem tail in jnp.
            # Avoids the full-array pad copy and the trailing slice of the output.
            n_main = (n // DEFAULT_LANE) * DEFAULT_LANE
            main = self._run_2d(xf[:n_main], n_main // DEFAULT_LANE,
                                DEFAULT_LANE, out_dtype)
            tail = xf[n_main:].astype(jnp.float32)
            tail = jnp.clip(jnp.floor(tail * self.scale), self.lower, self.upper)
            out_flat = jnp.concatenate([main, tail.astype(out_dtype)])

        return out_flat.reshape(orig_shape)


def reference(x, out_shift, bit_o, sgn_o):
    y = jnp.floor(x.astype(jnp.float32) / (2.0 ** out_shift))
    if sgn_o:
        upper = 2 ** (bit_o - 1) - 1
        lower = -(2 ** (bit_o - 1))
    else:
        upper = 2 ** bit_o - 1
        lower = 0
    return jnp.clip(y, lower, upper).astype(x.dtype)


if __name__ == "__main__":
    key = jax.random.PRNGKey(0)
    mod = PULPNNShiftClipPallas()  # BitI=8, BitW=8, BitO=8, SgnO=False -> shift=8

    # Primary test: small NCHW input, values spanning the pre-shift accumulator
    # range (2048 elements -> lane=512 aligned path, full-extent single block).
    k0, k1, k2 = jax.random.split(key, 3)
    x = jax.random.uniform(k0, (2, 4, 16, 16), dtype=jnp.float32,
                           minval=-70000.0, maxval=70000.0)
    out = mod(x)
    jax.block_until_ready(out)
    ref = reference(x, mod.out_shift, mod.BitO, mod.SgnO)
    assert out.shape == x.shape and out.dtype == x.dtype
    assert jnp.allclose(out, ref), "mismatch vs reference (aligned path)"

    # Misaligned mid-size input -> aligned-prefix + jnp tail path.
    x2 = jax.random.uniform(k1, (2, 600), dtype=jnp.float32,
                            minval=-70000.0, maxval=70000.0)
    out2 = mod(x2)
    jax.block_until_ready(out2)
    assert jnp.allclose(out2, reference(x2, mod.out_shift, mod.BitO, mod.SgnO)), \
        "mismatch vs reference (prefix+tail path)"

    # Tiny misaligned input -> single full-extent block path.
    x3 = jax.random.uniform(k2, (3, 5, 7), dtype=jnp.float32,
                            minval=-70000.0, maxval=70000.0)
    out3 = mod(x3)
    jax.block_until_ready(out3)
    assert jnp.allclose(out3, reference(x3, mod.out_shift, mod.BitO, mod.SgnO)), \
        "mismatch vs reference (small path)"

    print("KERNEL_OK")
</pallas_src>

<mosaic_0001>
module attributes {stable_mosaic.version = 11 : i64} {
  func.func @kernel(%arg0: i32, %arg1: memref<4x512xf32, #tpu.memory_space<vmem>>, %arg2: memref<4x512xf32, #tpu.memory_space<vmem>>) attributes {dimension_semantics = [#tpu.dimension_semantics<parallel>], iteration_bounds = array<i64: 1>, scalar_prefetch = 0 : i64, scratch_operands = 0 : i64, tpu.core_type = #tpu.core_type<tc>, window_params = [{transform_indices = @transform_0, window_bounds = array<i64: 4, 512>}, {transform_indices = @transform_1, window_bounds = array<i64: 4, 512>}]} {
    %c0 = arith.constant 0 : index
    %c0_0 = arith.constant 0 : index
    %0 = vector.load %arg1[%c0, %c0_0] : memref<4x512xf32, #tpu.memory_space<vmem>>, vector<4x512xf32>
    %cst = arith.constant 3.906250e-03 : f32
    %1 = vector.broadcast %cst : f32 to vector<4x512xf32>
    %2 = arith.mulf %0, %1 : vector<4x512xf32>
    %3 = math.floor %2 : vector<4x512xf32>
    %cst_1 = arith.constant 0.000000e+00 : f32
    %cst_2 = arith.constant 2.550000e+02 : f32
    %4 = vector.broadcast %cst_1 : f32 to vector<4x512xf32>
    %5 = arith.maximumf %4, %3 : vector<4x512xf32>
    %6 = vector.broadcast %cst_2 : f32 to vector<4x512xf32>
    %7 = arith.minimumf %6, %5 : vector<4x512xf32>
    %c0_3 = arith.constant 0 : index
    %c0_4 = arith.constant 0 : index
    %8 = vector.load %arg2[%c0_3, %c0_4] : memref<4x512xf32, #tpu.memory_space<vmem>>, vector<4x512xf32>
    tpu.vector_store %arg2[%c0_3, %c0_4], %7 {strides = array<i32>} : memref<4x512xf32, #tpu.memory_space<vmem>>, vector<4x512xf32>,
    return
  }
  func.func @transform_0(%arg0: i32) -> (i32, i32) {
    %c0_i32 = arith.constant 0 : i32
    %c0_i32_0 = arith.constant 0 : i32
    return %arg0, %c0_i32 : i32, i32
  }
  func.func @transform_1(%arg0: i32) -> (i32, i32) {
    %c0_i32 = arith.constant 0 : i32
    %c0_i32_0 = arith.constant 0 : i32
    return %arg0, %c0_i32 : i32, i32
  }
}

</mosaic_0001>

<bundles_post_ra>
// kernel: tpu_custom_call.1
= control target key start
LH: loop header
LB: loop body
LE: loop exit
PB: predicated region body
PF: predicated region fallthrough
CT: control target
= control target key end

     0   :  { %6 = vsyncpa [#allocation3], 0  ;;  %s134_s0 = inlined_call_operand.hbm [shape: f32[4,512], index: 0, kind: input, shape index: {}]   ;;  %s135_s1 = inlined_call_operand.hbm [shape: f32[4,512], index: 1, kind: output, shape index: {}]  }
   0x1   :  { %7 = vsyncpa [#allocation4], 0  ;;  %s98_s6 = smov [#allocation2]   ;;  %s50_s10 = scalar_lea.hbm %s134_s0, 256 }
   0x2   :  { %s14_s7 = sshll.u32 %s98_s6, 4  ;;  %p51_p0 = scmp.ne.s32.totalorder %s134_s0, %s50_s10  ;;  %s15_s7 = int_to_ptr.vmem [resolvable:$true] %s14_s7 }
   0x3   :  { %p54_p1 = scmp.lt.u32.totalorder %s50_s10, %s134_s0 }
   0x5   :  { %p56_p2 = pnand %p54_p1, %p51_p0 }
   0x7   :  { %59 = shalt.err (!%p56_p2)
}
   0x8   :  { %s60_s15 = scalar_lea.vmem %s15_s7, 256  ;;  %p65_p4 = scmp.lt.s32.totalorder %s15_s7, %s15_s7 }
   0x9   :  { %p61_p3 = scmp.ne.s32.totalorder %s15_s7, %s60_s15  ;;  %p66_p5 = scmp.lt.s32.totalorder %s60_s15, %s60_s15 }
   0xb   :  { %p67_p6 = por %p66_p5, %p65_p4 }
   0xd   :  { %p68_p7 = pnand %p67_p6, %p61_p3 }
   0xf   :  { %71 = shalt.err (!%p68_p7)
}
  0x10   :  { %17 = dma.hbm_to_vmem [thread:$0]  %s134_s0, 256, %s15_s7, [#allocation3]  }
  0x11   :  { %94 = dma.done.wait [#allocation3], 256  }
  0x12   :  { %95 = vsyncadd [#allocation3], 4294967040  ;;  %v21_v0 = vld [vmem:[#allocation2] sm:$0xff]  ;;  %v22_v1 = vld [vmem:[#allocation2 + $0x8] sm:$0xff]  ;;  %s99_s18 = smov [#allocation5]  }
  0x13   :  { %v23_v2 = vmul.f32 0.00390625, %v21_v0  ;;  %v24_v3 = vmul.f32 0.00390625, %v22_v1  ;;  %s39_s19 = sshll.u32 %s99_s18, 4  ;;  %s40_s19 = int_to_ptr.vmem [resolvable:$true] %s39_s19 }
  0x14   :  { %s72_s20 = scalar_lea.vmem %s40_s19, 256  ;;  %p77_p9 = scmp.lt.s32.totalorder %s40_s19, %s40_s19 }
  0x15   :  { %v25_v4 = vfloor.f32 %v23_v2  ;;  %v26_v5 = vfloor.f32 %v24_v3  ;;  %p73_p8 = scmp.ne.s32.totalorder %s40_s19, %s72_s20  ;;  %p78_p10 = scmp.lt.s32.totalorder %s72_s20, %s72_s20 }
  0x17   :  { %v27_v6 = vmax.f32 %v25_v4, 0.0  ;;  %v28_v7 = vmax.f32 %v26_v5, 0.0  ;;  %p79_p11 = por %p78_p10, %p77_p9 }
  0x19   :  { %v29_v8 = vmin.f32 %v27_v6, 255.0  ;;  %v30_v9 = vmin.f32 %v28_v7, 255.0  ;;  %p80_p12 = pnand %p79_p11, %p73_p8 }
  0x1b   :  { %31 = vst [vmem:[#allocation5] sm:$0xff] %v29_v8  ;;  %32 = vst [vmem:[#allocation5 + $0x8] sm:$0xff] %v30_v9 }
  0x1c   :  { %83 = shalt.err (!%p80_p12)
}
  0x1d   :  { %s84_s22 = scalar_lea.hbm %s135_s1, 256 }
  0x1e   :  { %p85_p13 = scmp.ne.s32.totalorder %s135_s1, %s84_s22  ;;  %p88_p0 = scmp.lt.u32.totalorder %s84_s22, %s135_s1 }
  0x20   :  { %p90_p1 = pnand %p88_p0, %p85_p13 }
  0x22   :  { %93 = shalt.err (!%p90_p1)
}
  0x23   :  { %42 = dma.vmem_to_hbm [thread:$0]  %s40_s19, 256, %s135_s1, [#allocation4]  }
  0x24   :  { %96 = dma.done.wait [#allocation4], 256  }
  0x25   :  { %97 = vsyncadd [#allocation4], 4294967040 }
  0x26   :  { %46 = vsyncpa [#allocation3], 1 }
  0x27   :  { %47 = vsyncpa [#allocation4], 1 }

</bundles_post_ra>
